<compile_context>
chip_gen: v6e
topology: v6e:2x2x1
jax: 0.10.0
libtpu: 0.0.40
codegen_flags: <defaults>
</compile_context>

<pallas_src>
import jax
import jax.numpy as jnp
from jax.experimental import pallas as pl
from jax.experimental.pallas import tpu as pltpu

# ----------------------------- model dims -----------------------------------
FEATS = 4
N_WINDOW = 5
N_HIDDEN = 16
N_LATENT = 5
N = FEATS * N_WINDOW          # 20
BS = 8

LANES = 128                   # TPU lane width
W_ROWS = 240                  # packed weight-slab rows
W_COLS = 2 * LANES            # 256

# Row offsets of each (fused) layer inside the weight slab (all 8-aligned).
_R_ENC1 = 0      # (128 -> 16): real (N, 16) in rows 0:N, rows N:128 are zero
_R_ENC2 = 128    # (16 -> 16)
_R_ENC3 = 144    # (16 -> 16): real (16, 5) in cols 0:5 (latent padded 5 -> 16)
_R_DEC1 = 160    # (16 -> 32): [d1w1 | d2w1], real rows 0:5
_R_DEC2 = 176    # (32 -> 32): block-diag(d1w2, d2w2)
_R_DEC3 = 208    # (32 -> 256): d1w3 -> cols 0:N, d2w3 -> cols 128:128+N


def _round_up(x, m):
    return (x + m - 1) // m * m


# ----------------------------- Pallas kernel --------------------------------
def usad_kernel(g_ref, w_ref, b_ref, out_ref):
    """g_ref: (tile, 128); w_ref: (240, 256); b_ref: (8, 256); out_ref: (tile, 384)."""

    def dense(x, r0, k, c, brow, act):
        w = w_ref[r0:r0 + k, 0:c]
        b = b_ref[brow:brow + 1, 0:c]
        y = jnp.dot(x, w, preferred_element_type=jnp.float32) + b
        return jnp.maximum(y, 0.0) if act == "relu" else jax.nn.sigmoid(y)

    def fwd(x):
        # Encoder: zero weight rows / zero bias lanes keep all padded lanes
        # exactly 0 through every ReLU layer, so padding never contaminates.
        h = dense(x, _R_ENC1, 128, N_HIDDEN, 0, "relu")
        h = dense(h, _R_ENC2, N_HIDDEN, N_HIDDEN, 1, "relu")
        z = dense(h, _R_ENC3, N_HIDDEN, N_HIDDEN, 2, "relu")
        # Fused decoder1 + decoder2 (3 matmuls instead of 6).
        d = dense(z, _R_DEC1, N_HIDDEN, 2 * N_HIDDEN, 3, "relu")
        d = dense(d, _R_DEC2, 2 * N_HIDDEN, 2 * N_HIDDEN, 4, "relu")
        # Final: decoder1 output in lanes [0:N], decoder2 output in [128:128+N].
        return dense(d, _R_DEC3, 2 * N_HIDDEN, 2 * LANES, 5, "sigmoid")

    o1 = fwd(g_ref[...])            # [decoder1(z) | decoder2(z)]
    # Re-encode ae1: lanes N:128 of o1 hold sigmoid(0)=0.5 garbage, but the
    # encoder's first-layer rows N:128 are zero, so they contribute nothing.
    o2 = fwd(o1[:, 0:LANES])        # decoder2(encoder(ae1)) lives in lanes 128:256

    out_ref[:, 0:2 * LANES] = o1                              # ae1 | ae2
    out_ref[:, 2 * LANES:3 * LANES] = o2[:, LANES:2 * LANES]  # ae2ae1


# ----------------------------- wrapper ---------------------------------------
def usad_forward(g, w_slab, b_slab, *, tile_bs=128):
    """g: (bs, n_window, feats) -> (ae1, ae2, ae2ae1), each (bs, N) float32."""
    bs = g.shape[0]
    g2d = g.reshape(bs, N).astype(jnp.float32)      # PyTorch g.view(bs, n)

    tile = min(tile_bs, _round_up(bs, 8))
    bs_pad = _round_up(bs, tile)
    # Lane-dense, zero-padded input slab (bs_pad, 128).
    g_pad = jnp.zeros((bs_pad, LANES), jnp.float32).at[:bs, :N].set(g2d)

    grid = (bs_pad // tile,)
    out = pl.pallas_call(
        usad_kernel,
        out_shape=jax.ShapeDtypeStruct((bs_pad, 3 * LANES), jnp.float32),
        grid=grid,
        in_specs=[
            pl.BlockSpec((tile, LANES), lambda i: (i, 0)),      # batch-tiled input
            pl.BlockSpec((W_ROWS, W_COLS), lambda i: (0, 0)),   # resident weights
            pl.BlockSpec((8, W_COLS), lambda i: (0, 0)),        # resident biases
        ],
        out_specs=pl.BlockSpec((tile, 3 * LANES), lambda i: (i, 0)),
        compiler_params=pltpu.CompilerParams(
            dimension_semantics=("parallel",)),
    )(g_pad, w_slab, b_slab)

    ae1 = out[:bs, 0:N]
    ae2 = out[:bs, LANES:LANES + N]
    ae2ae1 = out[:bs, 2 * LANES:2 * LANES + N]
    return ae1, ae2, ae2ae1


# ----------------------------- host-side packing ------------------------------
def pack_params(params):
    """Pack the 18 per-layer tensors into one weight slab and one bias slab."""
    (ew1, eb1, ew2, eb2, ew3, eb3,
     d1w1, d1b1, d1w2, d1b2, d1w3, d1b3,
     d2w1, d2b1, d2w2, d2b2, d2w3, d2b3) = params

    W = jnp.zeros((W_ROWS, W_COLS), jnp.float32)
    B = jnp.zeros((8, W_COLS), jnp.float32)

    # encoder
    W = W.at[_R_ENC1:_R_ENC1 + N, 0:N_HIDDEN].set(ew1)
    B = B.at[0, 0:N_HIDDEN].set(eb1.reshape(-1))
    W = W.at[_R_ENC2:_R_ENC2 + N_HIDDEN, 0:N_HIDDEN].set(ew2)
    B = B.at[1, 0:N_HIDDEN].set(eb2.reshape(-1))
    W = W.at[_R_ENC3:_R_ENC3 + N_HIDDEN, 0:N_LATENT].set(ew3)
    B = B.at[2, 0:N_LATENT].set(eb3.reshape(-1))
    # fused decoder layer 1: [d1w1 | d2w1]
    W = W.at[_R_DEC1:_R_DEC1 + N_LATENT, 0:N_HIDDEN].set(d1w1)
    W = W.at[_R_DEC1:_R_DEC1 + N_LATENT, N_HIDDEN:2 * N_HIDDEN].set(d2w1)
    B = B.at[3, 0:N_HIDDEN].set(d1b1.reshape(-1))
    B = B.at[3, N_HIDDEN:2 * N_HIDDEN].set(d2b1.reshape(-1))
    # fused decoder layer 2: block-diag(d1w2, d2w2)
    W = W.at[_R_DEC2:_R_DEC2 + N_HIDDEN, 0:N_HIDDEN].set(d1w2)
    W = W.at[_R_DEC2 + N_HIDDEN:_R_DEC2 + 2 * N_HIDDEN,
             N_HIDDEN:2 * N_HIDDEN].set(d2w2)
    B = B.at[4, 0:N_HIDDEN].set(d1b2.reshape(-1))
    B = B.at[4, N_HIDDEN:2 * N_HIDDEN].set(d2b2.reshape(-1))
    # fused decoder layer 3: decoder1 -> lanes 0:N, decoder2 -> lanes 128:128+N
    W = W.at[_R_DEC3:_R_DEC3 + N_HIDDEN, 0:N].set(d1w3)
    W = W.at[_R_DEC3 + N_HIDDEN:_R_DEC3 + 2 * N_HIDDEN, LANES:LANES + N].set(d2w3)
    B = B.at[5, 0:N].set(d1b3.reshape(-1))
    B = B.at[5, LANES:LANES + N].set(d2b3.reshape(-1))
    return W, B


# ----------------------------- param init ------------------------------------
def init_params(key):
    """Deterministic init matching the nn.Linear shapes of USADModel.

    Weights are stored transposed relative to PyTorch (in_features,
    out_features) so the kernel can do x @ W + b directly.
    """
    def linear_init(key, fan_in, fan_out):
        kw, kb = jax.random.split(key)
        bound = 1.0 / jnp.sqrt(fan_in)
        w = jax.random.uniform(kw, (fan_in, fan_out), jnp.float32, -bound, bound)
        b = jax.random.uniform(kb, (1, fan_out), jnp.float32, -bound, bound)
        return w, b

    dims = [
        # encoder
        (N, N_HIDDEN), (N_HIDDEN, N_HIDDEN), (N_HIDDEN, N_LATENT),
        # decoder1
        (N_LATENT, N_HIDDEN), (N_HIDDEN, N_HIDDEN), (N_HIDDEN, N),
        # decoder2
        (N_LATENT, N_HIDDEN), (N_HIDDEN, N_HIDDEN), (N_HIDDEN, N),
    ]
    keys = jax.random.split(key, len(dims))
    params = []
    for k, (fi, fo) in zip(keys, dims):
        w, b = linear_init(k, fi, fo)
        params.extend([w, b])
    return params


# ----------------------------- reference (pure JAX) --------------------------
def usad_forward_ref(g, params):
    bs = g.shape[0]
    x = g.reshape(bs, N).astype(jnp.float32)
    (ew1, eb1, ew2, eb2, ew3, eb3,
     d1w1, d1b1, d1w2, d1b2, d1w3, d1b3,
     d2w1, d2b1, d2w2, d2b2, d2w3, d2b3) = params

    def enc(x):
        h = jnp.maximum(x @ ew1 + eb1, 0.0)
        h = jnp.maximum(h @ ew2 + eb2, 0.0)
        return jnp.maximum(h @ ew3 + eb3, 0.0)

    def dec1(z):
        h = jnp.maximum(z @ d1w1 + d1b1, 0.0)
        h = jnp.maximum(h @ d1w2 + d1b2, 0.0)
        return jax.nn.sigmoid(h @ d1w3 + d1b3)

    def dec2(z):
        h = jnp.maximum(z @ d2w1 + d2b1, 0.0)
        h = jnp.maximum(h @ d2w2 + d2b2, 0.0)
        return jax.nn.sigmoid(h @ d2w3 + d2b3)

    z = enc(x)
    ae1 = dec1(z)
    ae2 = dec2(z)
    ae2ae1 = dec2(enc(ae1))
    return ae1, ae2, ae2ae1


# ----------------------------- main -------------------------------------------
if __name__ == "__main__":
    key = jax.random.PRNGKey(0)
    k_in, k_params = jax.random.split(key)

    g = jax.random.uniform(k_in, (BS, N_WINDOW, FEATS), jnp.float32)
    params = init_params(k_params)
    w_slab, b_slab = pack_params(params)

    ae1, ae2, ae2ae1 = usad_forward(g, w_slab, b_slab)
    jax.block_until_ready((ae1, ae2, ae2ae1))

    # sanity check against pure-JAX (unfused) reference
    r1, r2, r3 = usad_forward_ref(g, params)
    assert ae1.shape == (BS, N) and ae2.shape == (BS, N) and ae2ae1.shape == (BS, N)
    assert jnp.allclose(ae1, r1, atol=1e-5), "ae1 mismatch"
    assert jnp.allclose(ae2, r2, atol=1e-5), "ae2 mismatch"
    assert jnp.allclose(ae2ae1, r3, atol=1e-5), "ae2ae1 mismatch"

    print("KERNEL_OK")
</pallas_src>

<mosaic_0001>
module attributes {stable_mosaic.version = 11 : i64} {
  func.func @usad_kernel(%arg0: i32, %arg1: memref<8x128xf32, #tpu.memory_space<vmem>>, %arg2: memref<240x256xf32, #tpu.memory_space<vmem>>, %arg3: memref<8x256xf32, #tpu.memory_space<vmem>>, %arg4: memref<8x384xf32, #tpu.memory_space<vmem>>) attributes {dimension_semantics = [#tpu.dimension_semantics<parallel>], iteration_bounds = array<i64: 1>, scalar_prefetch = 0 : i64, scratch_operands = 0 : i64, tpu.core_type = #tpu.core_type<tc>, window_params = [{transform_indices = @transform_0, window_bounds = array<i64: 8, 128>}, {pipeline_mode = #tpu.pipeline_mode<synchronous>, transform_indices = @transform_1, window_bounds = array<i64: 240, 256>}, {pipeline_mode = #tpu.pipeline_mode<synchronous>, transform_indices = @transform_2, window_bounds = array<i64: 8, 256>}, {transform_indices = @transform_3, window_bounds = array<i64: 8, 384>}]} {
    %c0 = arith.constant 0 : index
    %c0_0 = arith.constant 0 : index
    %0 = vector.load %arg1[%c0, %c0_0] : memref<8x128xf32, #tpu.memory_space<vmem>>, vector<8x128xf32>
    %c0_1 = arith.constant 0 : index
    %c0_2 = arith.constant 0 : index
    %1 = vector.load %arg2[%c0_1, %c0_2] : memref<240x256xf32, #tpu.memory_space<vmem>>, vector<128x16xf32>
    %c0_3 = arith.constant 0 : index
    %c0_4 = arith.constant 0 : index
    %2 = vector.load %arg3[%c0_3, %c0_4] : memref<8x256xf32, #tpu.memory_space<vmem>>, vector<1x16xf32>
    %cst = arith.constant dense<0.000000e+00> : vector<8x16xf32>
    %3 = tpu.matmul %0, %1, %cst {dimension_numbers = #tpu.dot_dimension_numbers<[1], [0], [0], [1], [0, 0, 1, 1], [], []>} : vector<8x128xf32>, vector<128x16xf32>, vector<8x16xf32> -> vector<8x16xf32>
    %4 = vector.broadcast %2 : vector<1x16xf32> to vector<8x16xf32>
    %5 = arith.addf %3, %4 : vector<8x16xf32>
    %cst_5 = arith.constant 0.000000e+00 : f32
    %6 = vector.broadcast %cst_5 : f32 to vector<8x16xf32>
    %7 = arith.maximumf %5, %6 : vector<8x16xf32>
    %c128 = arith.constant 128 : index
    %c0_6 = arith.constant 0 : index
    %8 = vector.load %arg2[%c128, %c0_6] : memref<240x256xf32, #tpu.memory_space<vmem>>, vector<16x16xf32>
    %c1 = arith.constant 1 : index
    %c0_7 = arith.constant 0 : index
    %9 = vector.load %arg3[%c1, %c0_7] : memref<8x256xf32, #tpu.memory_space<vmem>>, vector<1x16xf32>
    %cst_8 = arith.constant dense<0.000000e+00> : vector<8x16xf32>
    %10 = tpu.matmul %7, %8, %cst_8 {dimension_numbers = #tpu.dot_dimension_numbers<[1], [0], [0], [1], [0, 0, 1, 1], [], []>} : vector<8x16xf32>, vector<16x16xf32>, vector<8x16xf32> -> vector<8x16xf32>
    %11 = vector.broadcast %9 : vector<1x16xf32> to vector<8x16xf32>
    %12 = arith.addf %10, %11 : vector<8x16xf32>
    %cst_9 = arith.constant 0.000000e+00 : f32
    %13 = vector.broadcast %cst_9 : f32 to vector<8x16xf32>
    %14 = arith.maximumf %12, %13 : vector<8x16xf32>
    %c144 = arith.constant 144 : index
    %c0_10 = arith.constant 0 : index
    %15 = vector.load %arg2[%c144, %c0_10] : memref<240x256xf32, #tpu.memory_space<vmem>>, vector<16x16xf32>
    %c2 = arith.constant 2 : index
    %c0_11 = arith.constant 0 : index
    %16 = vector.load %arg3[%c2, %c0_11] : memref<8x256xf32, #tpu.memory_space<vmem>>, vector<1x16xf32>
    %cst_12 = arith.constant dense<0.000000e+00> : vector<8x16xf32>
    %17 = tpu.matmul %14, %15, %cst_12 {dimension_numbers = #tpu.dot_dimension_numbers<[1], [0], [0], [1], [0, 0, 1, 1], [], []>} : vector<8x16xf32>, vector<16x16xf32>, vector<8x16xf32> -> vector<8x16xf32>
    %18 = vector.broadcast %16 : vector<1x16xf32> to vector<8x16xf32>
    %19 = arith.addf %17, %18 : vector<8x16xf32>
    %cst_13 = arith.constant 0.000000e+00 : f32
    %20 = vector.broadcast %cst_13 : f32 to vector<8x16xf32>
    %21 = arith.maximumf %19, %20 : vector<8x16xf32>
    %c160 = arith.constant 160 : index
    %c0_14 = arith.constant 0 : index
    %22 = vector.load %arg2[%c160, %c0_14] : memref<240x256xf32, #tpu.memory_space<vmem>>, vector<16x32xf32>
    %c3 = arith.constant 3 : index
    %c0_15 = arith.constant 0 : index
    %23 = vector.load %arg3[%c3, %c0_15] : memref<8x256xf32, #tpu.memory_space<vmem>>, vector<1x32xf32>
    %cst_16 = arith.constant dense<0.000000e+00> : vector<8x32xf32>
    %24 = tpu.matmul %21, %22, %cst_16 {dimension_numbers = #tpu.dot_dimension_numbers<[1], [0], [0], [1], [0, 0, 1, 1], [], []>} : vector<8x16xf32>, vector<16x32xf32>, vector<8x32xf32> -> vector<8x32xf32>
    %25 = vector.broadcast %23 : vector<1x32xf32> to vector<8x32xf32>
    %26 = arith.addf %24, %25 : vector<8x32xf32>
    %cst_17 = arith.constant 0.000000e+00 : f32
    %27 = vector.broadcast %cst_17 : f32 to vector<8x32xf32>
    %28 = arith.maximumf %26, %27 : vector<8x32xf32>
    %c176 = arith.constant 176 : index
    %c0_18 = arith.constant 0 : index
    %29 = vector.load %arg2[%c176, %c0_18] : memref<240x256xf32, #tpu.memory_space<vmem>>, vector<32x32xf32>
    %c4 = arith.constant 4 : index
    %c0_19 = arith.constant 0 : index
    %30 = vector.load %arg3[%c4, %c0_19] : memref<8x256xf32, #tpu.memory_space<vmem>>, vector<1x32xf32>
    %cst_20 = arith.constant dense<0.000000e+00> : vector<8x32xf32>
    %31 = tpu.matmul %28, %29, %cst_20 {dimension_numbers = #tpu.dot_dimension_numbers<[1], [0], [0], [1], [0, 0, 1, 1], [], []>} : vector<8x32xf32>, vector<32x32xf32>, vector<8x32xf32> -> vector<8x32xf32>
    %32 = vector.broadcast %30 : vector<1x32xf32> to vector<8x32xf32>
    %33 = arith.addf %31, %32 : vector<8x32xf32>
    %cst_21 = arith.constant 0.000000e+00 : f32
    %34 = vector.broadcast %cst_21 : f32 to vector<8x32xf32>
    %35 = arith.maximumf %33, %34 : vector<8x32xf32>
    %c208 = arith.constant 208 : index
    %c0_22 = arith.constant 0 : index
    %36 = vector.load %arg2[%c208, %c0_22] : memref<240x256xf32, #tpu.memory_space<vmem>>, vector<32x256xf32>
    %c5 = arith.constant 5 : index
    %c0_23 = arith.constant 0 : index
    %37 = vector.load %arg3[%c5, %c0_23] : memref<8x256xf32, #tpu.memory_space<vmem>>, vector<1x256xf32>
    %cst_24 = arith.constant dense<0.000000e+00> : vector<8x256xf32>
    %38 = tpu.matmul %35, %36, %cst_24 {dimension_numbers = #tpu.dot_dimension_numbers<[1], [0], [0], [1], [0, 0, 1, 1], [], []>} : vector<8x32xf32>, vector<32x256xf32>, vector<8x256xf32> -> vector<8x256xf32>
    %39 = vector.broadcast %37 : vector<1x256xf32> to vector<8x256xf32>
    %40 = arith.addf %38, %39 : vector<8x256xf32>
    %41 = arith.negf %40 : vector<8x256xf32>
    %42 = math.exp %41 : vector<8x256xf32>
    %cst_25 = arith.constant 1.000000e+00 : f32
    %43 = vector.broadcast %cst_25 : f32 to vector<8x256xf32>
    %44 = arith.addf %43, %42 : vector<8x256xf32>
    %45 = arith.divf %43, %44 : vector<8x256xf32>
    %46 = vector.extract_strided_slice %45 {offsets = [0, 0], sizes = [8, 128], strides = [1, 1]} : vector<8x256xf32> to vector<8x128xf32>
    %c0_26 = arith.constant 0 : index
    %c0_27 = arith.constant 0 : index
    %47 = vector.load %arg2[%c0_26, %c0_27] : memref<240x256xf32, #tpu.memory_space<vmem>>, vector<128x16xf32>
    %c0_28 = arith.constant 0 : index
    %c0_29 = arith.constant 0 : index
    %48 = vector.load %arg3[%c0_28, %c0_29] : memref<8x256xf32, #tpu.memory_space<vmem>>, vector<1x16xf32>
    %cst_30 = arith.constant dense<0.000000e+00> : vector<8x16xf32>
    %49 = tpu.matmul %46, %47, %cst_30 {dimension_numbers = #tpu.dot_dimension_numbers<[1], [0], [0], [1], [0, 0, 1, 1], [], []>} : vector<8x128xf32>, vector<128x16xf32>, vector<8x16xf32> -> vector<8x16xf32>
    %50 = vector.broadcast %48 : vector<1x16xf32> to vector<8x16xf32>
    %51 = arith.addf %49, %50 : vector<8x16xf32>
    %cst_31 = arith.constant 0.000000e+00 : f32
    %52 = vector.broadcast %cst_31 : f32 to vector<8x16xf32>
    %53 = arith.maximumf %51, %52 : vector<8x16xf32>
    %c128_32 = arith.constant 128 : index
    %c0_33 = arith.constant 0 : index
    %54 = vector.load %arg2[%c128_32, %c0_33] : memref<240x256xf32, #tpu.memory_space<vmem>>, vector<16x16xf32>
    %c1_34 = arith.constant 1 : index
    %c0_35 = arith.constant 0 : index
    %55 = vector.load %arg3[%c1_34, %c0_35] : memref<8x256xf32, #tpu.memory_space<vmem>>, vector<1x16xf32>
    %cst_36 = arith.constant dense<0.000000e+00> : vector<8x16xf32>
    %56 = tpu.matmul %53, %54, %cst_36 {dimension_numbers = #tpu.dot_dimension_numbers<[1], [0], [0], [1], [0, 0, 1, 1], [], []>} : vector<8x16xf32>, vector<16x16xf32>, vector<8x16xf32> -> vector<8x16xf32>
    %57 = vector.broadcast %55 : vector<1x16xf32> to vector<8x16xf32>
    %58 = arith.addf %56, %57 : vector<8x16xf32>
    %cst_37 = arith.constant 0.000000e+00 : f32
    %59 = vector.broadcast %cst_37 : f32 to vector<8x16xf32>
    %60 = arith.maximumf %58, %59 : vector<8x16xf32>
    %c144_38 = arith.constant 144 : index
    %c0_39 = arith.constant 0 : index
    %61 = vector.load %arg2[%c144_38, %c0_39] : memref<240x256xf32, #tpu.memory_space<vmem>>, vector<16x16xf32>
    %c2_40 = arith.constant 2 : index
    %c0_41 = arith.constant 0 : index
    %62 = vector.load %arg3[%c2_40, %c0_41] : memref<8x256xf32, #tpu.memory_space<vmem>>, vector<1x16xf32>
    %cst_42 = arith.constant dense<0.000000e+00> : vector<8x16xf32>
    %63 = tpu.matmul %60, %61, %cst_42 {dimension_numbers = #tpu.dot_dimension_numbers<[1], [0], [0], [1], [0, 0, 1, 1], [], []>} : vector<8x16xf32>, vector<16x16xf32>, vector<8x16xf32> -> vector<8x16xf32>
    %64 = vector.broadcast %62 : vector<1x16xf32> to vector<8x16xf32>
    %65 = arith.addf %63, %64 : vector<8x16xf32>
    %cst_43 = arith.constant 0.000000e+00 : f32
    %66 = vector.broadcast %cst_43 : f32 to vector<8x16xf32>
    %67 = arith.maximumf %65, %66 : vector<8x16xf32>
    %c160_44 = arith.constant 160 : index
    %c0_45 = arith.constant 0 : index
    %68 = vector.load %arg2[%c160_44, %c0_45] : memref<240x256xf32, #tpu.memory_space<vmem>>, vector<16x32xf32>
    %c3_46 = arith.constant 3 : index
    %c0_47 = arith.constant 0 : index
    %69 = vector.load %arg3[%c3_46, %c0_47] : memref<8x256xf32, #tpu.memory_space<vmem>>, vector<1x32xf32>
    %cst_48 = arith.constant dense<0.000000e+00> : vector<8x32xf32>
    %70 = tpu.matmul %67, %68, %cst_48 {dimension_numbers = #tpu.dot_dimension_numbers<[1], [0], [0], [1], [0, 0, 1, 1], [], []>} : vector<8x16xf32>, vector<16x32xf32>, vector<8x32xf32> -> vector<8x32xf32>
    %71 = vector.broadcast %69 : vector<1x32xf32> to vector<8x32xf32>
    %72 = arith.addf %70, %71 : vector<8x32xf32>
    %cst_49 = arith.constant 0.000000e+00 : f32
    %73 = vector.broadcast %cst_49 : f32 to vector<8x32xf32>
    %74 = arith.maximumf %72, %73 : vector<8x32xf32>
    %c176_50 = arith.constant 176 : index
    %c0_51 = arith.constant 0 : index
    %75 = vector.load %arg2[%c176_50, %c0_51] : memref<240x256xf32, #tpu.memory_space<vmem>>, vector<32x32xf32>
    %c4_52 = arith.constant 4 : index
    %c0_53 = arith.constant 0 : index
    %76 = vector.load %arg3[%c4_52, %c0_53] : memref<8x256xf32, #tpu.memory_space<vmem>>, vector<1x32xf32>
    %cst_54 = arith.constant dense<0.000000e+00> : vector<8x32xf32>
    %77 = tpu.matmul %74, %75, %cst_54 {dimension_numbers = #tpu.dot_dimension_numbers<[1], [0], [0], [1], [0, 0, 1, 1], [], []>} : vector<8x32xf32>, vector<32x32xf32>, vector<8x32xf32> -> vector<8x32xf32>
    %78 = vector.broadcast %76 : vector<1x32xf32> to vector<8x32xf32>
    %79 = arith.addf %77, %78 : vector<8x32xf32>
    %cst_55 = arith.constant 0.000000e+00 : f32
    %80 = vector.broadcast %cst_55 : f32 to vector<8x32xf32>
    %81 = arith.maximumf %79, %80 : vector<8x32xf32>
    %c208_56 = arith.constant 208 : index
    %c0_57 = arith.constant 0 : index
    %82 = vector.load %arg2[%c208_56, %c0_57] : memref<240x256xf32, #tpu.memory_space<vmem>>, vector<32x256xf32>
    %c5_58 = arith.constant 5 : index
    %c0_59 = arith.constant 0 : index
    %83 = vector.load %arg3[%c5_58, %c0_59] : memref<8x256xf32, #tpu.memory_space<vmem>>, vector<1x256xf32>
    %cst_60 = arith.constant dense<0.000000e+00> : vector<8x256xf32>
    %84 = tpu.matmul %81, %82, %cst_60 {dimension_numbers = #tpu.dot_dimension_numbers<[1], [0], [0], [1], [0, 0, 1, 1], [], []>} : vector<8x32xf32>, vector<32x256xf32>, vector<8x256xf32> -> vector<8x256xf32>
    %85 = vector.broadcast %83 : vector<1x256xf32> to vector<8x256xf32>
    %86 = arith.addf %84, %85 : vector<8x256xf32>
    %87 = arith.negf %86 : vector<8x256xf32>
    %88 = math.exp %87 : vector<8x256xf32>
    %cst_61 = arith.constant 1.000000e+00 : f32
    %89 = vector.broadcast %cst_61 : f32 to vector<8x256xf32>
    %90 = arith.addf %89, %88 : vector<8x256xf32>
    %91 = arith.divf %89, %90 : vector<8x256xf32>
    %c0_62 = arith.constant 0 : index
    %c0_63 = arith.constant 0 : index
    %92 = vector.load %arg4[%c0_62, %c0_63] : memref<8x384xf32, #tpu.memory_space<vmem>>, vector<8x256xf32>
    tpu.vector_store %arg4[%c0_62, %c0_63], %45 {strides = array<i32>} : memref<8x384xf32, #tpu.memory_space<vmem>>, vector<8x256xf32>,
    %93 = vector.extract_strided_slice %91 {offsets = [0, 128], sizes = [8, 128], strides = [1, 1]} : vector<8x256xf32> to vector<8x128xf32>
    %c0_64 = arith.constant 0 : index
    %c256 = arith.constant 256 : index
    %94 = vector.load %arg4[%c0_64, %c256] : memref<8x384xf32, #tpu.memory_space<vmem>>, vector<8x128xf32>
    tpu.vector_store %arg4[%c0_64, %c256], %93 {strides = array<i32>} : memref<8x384xf32, #tpu.memory_space<vmem>>, vector<8x128xf32>,
    return
  }
  func.func @transform_0(%arg0: i32) -> (i32, i32) {
    %c0_i32 = arith.constant 0 : i32
    %c0_i32_0 = arith.constant 0 : i32
    return %arg0, %c0_i32 : i32, i32
  }
  func.func @transform_1(%arg0: i32) -> (i32, i32) {
    %c0_i32 = arith.constant 0 : i32
    %c0_i32_0 = arith.constant 0 : i32
    %c0_i32_1 = arith.constant 0 : i32
    return %c0_i32, %c0_i32_0 : i32, i32
  }
  func.func @transform_2(%arg0: i32) -> (i32, i32) {
    %c0_i32 = arith.constant 0 : i32
    %c0_i32_0 = arith.constant 0 : i32
    %c0_i32_1 = arith.constant 0 : i32
    return %c0_i32, %c0_i32_0 : i32, i32
  }
  func.func @transform_3(%arg0: i32) -> (i32, i32) {
    %c0_i32 = arith.constant 0 : i32
    %c0_i32_0 = arith.constant 0 : i32
    return %arg0, %c0_i32 : i32, i32
  }
}

</mosaic_0001>

<bundles_post_ra>
// kernel: tpu_custom_call.1
= control target key start
LH: loop header
LB: loop body
LE: loop exit
PB: predicated region body
PF: predicated region fallthrough
CT: control target
= control target key end

     0   :  { %8 = vsyncpa [#allocation3], 0  ;;  %s1616_s0 = inlined_call_operand.hbm [shape: f32[8,128], index: 0, kind: input, shape index: {}]   ;;  %s1617_s1 = inlined_call_operand.hbm [shape: f32[240,256], index: 1, kind: input, shape index: {}]   ;;  %s1618_s2 = inlined_call_operand.hbm [shape: f32[8,256], index: 2, kind: input, shape index: {}]   ;;  %s1619_s3 = inlined_call_operand.hbm [shape: f32[8,384], index: 3, kind: output, shape index: {}]  }
   0x1   :  { %9 = vsyncpa [#allocation6], 0 }
   0x2   :  { %10 = vsyncpa [#allocation4], 0  ;;  %s1340_s12 = smov [#allocation5]  }
   0x3   :  { %s26_s13 = sshll.u32 %s1340_s12, 4  ;;  %s27_s13 = int_to_ptr.vmem [resolvable:$true] %s26_s13 }
   0x4   :  { %s1262_s14 = scalar_lea.vmem %s27_s13, 7680  ;;  %p1267_p1 = scmp.lt.s32.totalorder %s27_s13, %s27_s13 }
   0x5   :  { %p1263_p0 = scmp.ne.s32.totalorder %s27_s13, %s1262_s14  ;;  %p1268_p2 = scmp.lt.s32.totalorder %s1262_s14, %s1262_s14 }
   0x7   :  { %p1269_p3 = por %p1268_p2, %p1267_p1 }
   0x9   :  { %p1270_p4 = pnand %p1269_p3, %p1263_p0 }
   0xb   :  { %1273 = shalt.err (!%p1270_p4)
}
   0xc   :  { %s1341_s15 = smov 256   ;;  %s1342_s16 = smov 16  }
   0xd   :  { %32 = dma.hbm_to_vmem [thread:$0]  %s1617_s1, 7680, %s27_s13, [#allocation6], %s1341_s15, %s1341_s15, %s1342_s16  }
   0xe   :  { %s1343_s19 = smov [#allocation2]   ;;  %s1344_s21 = smov [#allocation7]  }
   0xf   :  { %s17_s20 = sshll.u32 %s1343_s19, 4  ;;  %s39_s22 = sshll.u32 %s1344_s21, 4  ;;  %s18_s20 = int_to_ptr.vmem [resolvable:$true] %s17_s20  ;;  %s40_s22 = int_to_ptr.vmem [resolvable:$true] %s39_s22 }
  0x10   :  { %s1282_s23 = scalar_lea.vmem %s18_s20, 128  ;;  %p1287_p6 = scmp.lt.s32.totalorder %s18_s20, %s18_s20 }
  0x11   :  { %p1283_p5 = scmp.ne.s32.totalorder %s18_s20, %s1282_s23  ;;  %p1288_p7 = scmp.lt.s32.totalorder %s1282_s23, %s1282_s23 }
  0x13   :  { %p1289_p8 = por %p1288_p7, %p1287_p6 }
  0x15   :  { %p1290_p9 = pnand %p1289_p8, %p1283_p5 }
  0x17   :  { %1293 = shalt.err (!%p1290_p9)
}
  0x18   :  { %20 = dma.hbm_to_vmem [thread:$0]  %s1616_s0, 128, %s18_s20, [#allocation3]  }
  0x19   :  { %s1302_s26 = scalar_lea.vmem %s40_s22, 256  ;;  %p1307_p11 = scmp.lt.s32.totalorder %s40_s22, %s40_s22 }
  0x1a   :  { %p1303_p10 = scmp.ne.s32.totalorder %s40_s22, %s1302_s26  ;;  %p1308_p12 = scmp.lt.s32.totalorder %s1302_s26, %s1302_s26 }
  0x1c   :  { %p1309_p13 = por %p1308_p12, %p1307_p11 }
  0x1e   :  { %p1310_p0 = pnand %p1309_p13, %p1303_p10 }
  0x20   :  { %1313 = shalt.err (!%p1310_p0)
}
  0x21   :  { %42 = dma.hbm_to_vmem [thread:$0]  %s1618_s2, 256, %s40_s22, [#allocation6]  }
  0x22   :  { %1334 = dma.done.wait [#allocation3], 128  }
  0x23   :  { %1335 = vsyncadd [#allocation3], 4294967168 }
  0x24   :  { %1336 = dma.done.wait [#allocation6], 7936  }
  0x25   :  { %1337 = vsyncadd [#allocation6], 4294959360  ;;  %v1345_v0 = vmov 0.0   ;;  %vm1346_vm0 = vmmov 0   ;;  %v1383_v1 = vld [vmem:[#allocation5 + $0xf0] sm:$0xff]  ;;  %v1385_v2 = vld [vmem:[#allocation5 + $0xe0] sm:$0xff]  ;;  %v464_v61 = vlaneseq }
  0x26   :  { %1100 = vmatprep.subr.mxu0 %v1345_v0  ;;  %1132 = vmatprep.mubr.msk.f32.mxu0 %vm1346_vm0, %v1345_v0  ;;  %v1389_v3 = vld [vmem:[#allocation5 + $0xd0] sm:$0xff]  ;;  %v1393_v4 = vld [vmem:[#allocation5 + $0xc0] sm:$0xff]  ;;  %v52_v17 = vld [vmem:[#allocation2] sm:$0xff]  ;;  %vm144_vm1 = vcmask 130048   ;;  %vm378_vm2 = vcmask 261120   ;;  %s1347_s0 = smov [#allocation8]  }
  0x27   :  { %1135 = vmatprep.subr.mxu1 %v1345_v0  ;;  %1139 = vmatprep.mubr.msk.f32.mxu1 %vm1346_vm0, %v1345_v0  ;;  %v1397_v5 = vld [vmem:[#allocation5 + $0xb0] sm:$0xff]  ;;  %v1401_v6 = vld [vmem:[#allocation5 + $0xa0] sm:$0xff]  ;;  %v1502_v43 = vld [vmem:[#allocation5 + $0x1d8] sm:$0xff]  ;;  %v465_v62 = vshrl.u32 %v464_v61, 7  ;;  %s1015_s2 = sshll.u32 %s1347_s0, 4  ;;  %s1016_s2 = int_to_ptr.vmem [resolvable:$true] %s1015_s2 }
  0x28   :  { %1101 = vmatpush3.msra.mxu0 %v1383_v1  ;;  %v1405_v7 = vld [vmem:[#allocation5 + $0x90] sm:$0xff]  ;;  %v1409_v8 = vld [vmem:[#allocation5 + $0x80] sm:$0xff]  ;;  %v1510_v50 = vld [vmem:[#allocation5 + $0x1c8] sm:$0xff]  ;;  %s1314_s28 = scalar_lea.vmem %s1016_s2, 384  ;;  %p1319_p2 = scmp.lt.s32.totalorder %s1016_s2, %s1016_s2 }
  0x29   :  { %1102 = vmatprep.subr.mxu0 %v1345_v0  ;;  %v1413_v9 = vld [vmem:[#allocation5 + $0x70] sm:$0xff]  ;;  %v1417_v10 = vld [vmem:[#allocation5 + $0x60] sm:$0xff]  ;;  %v1519_v52 = vld [vmem:[#allocation5 + $0x1b8] sm:$0xff]  ;;  %v466_v63 = vsub.s32 0, %v465_v62  ;;  %p1315_p1 = scmp.ne.s32.totalorder %s1016_s2, %s1314_s28  ;;  %p1320_p3 = scmp.lt.s32.totalorder %s1314_s28, %s1314_s28 }
  0x2a   :  { %1103 = vmatpush3.msra.mxu0 %v1385_v2  ;;  %v1421_v11 = vld [vmem:[#allocation5 + $0x50] sm:$0xff]  ;;  %v1425_v12 = vld [vmem:[#allocation5 + $0x40] sm:$0xff]  ;;  %v1525_v54 = vld [vmem:[#allocation5 + $0x1a8] sm:$0xff] }
  0x2b   :  { %1104 = vmatprep.subr.mxu0 %v1345_v0  ;;  %v1429_v13 = vld [vmem:[#allocation5 + $0x30] sm:$0xff]  ;;  %v1433_v14 = vld [vmem:[#allocation5 + $0x20] sm:$0xff]  ;;  %p1321_p4 = por %p1320_p3, %p1319_p2 }
  0x2c   :  { %1105 = vmatpush3.msra.mxu0 %v1389_v3  ;;  %v1437_v15 = vld [vmem:[#allocation5 + $0x10] sm:$0xff]  ;;  %v1441_v16 = vld [vmem:[#allocation5] sm:$0xff] }
  0x2d   :  { %1106 = vmatprep.subr.mxu0 %v1345_v0  ;;  %v142_v18 = vld [vmem:[#allocation5 + $0x110] sm:$0xff]  ;;  %v141_v19 = vld [vmem:[#allocation5 + $0x100] sm:$0xff]  ;;  %p1322_p5 = pnand %p1321_p4, %p1315_p1 }
  0x2e   :  { %1107 = vmatpush3.msra.mxu0 %v1393_v4  ;;  %1136 = vmatpush3.msra.mxu1 %v142_v18  ;;  %v1453_v20 = vld [vmem:[#allocation7] ss:$0 sm:$0xff]  ;;  %v1459_v25 = vld [vmem:[#allocation5 + $0x130] sm:$0xff]  ;;  %v1467_v27 = vld [vmem:[#allocation7 + $0x1] ss:$0 sm:$0xff] }
  0x2f   :  { %1108 = vmatprep.subr.mxu0 %v1345_v0  ;;  %1137 = vmatprep.subr.mxu1 %v1345_v0  ;;  %v1463_v26 = vld [vmem:[#allocation5 + $0x120] sm:$0xff]  ;;  %v1473_v32 = vld [vmem:[#allocation5 + $0x150] sm:$0xff] }
  0x30   :  { %1109 = vmatpush3.msra.mxu0 %v1397_v5  ;;  %1138 = vmatpush3.msra.mxu1 %v141_v19  ;;  %v1477_v33 = vld [vmem:[#allocation5 + $0x140] sm:$0xff]  ;;  %v1484_v39 = vld [vmem:[#allocation5 + $0x190] sm:$0xff] }
  0x31   :  { %1110 = vmatprep.subr.mxu0 %v1345_v0  ;;  %1142 = vmatprep.subr.mxu1 %v1345_v0  ;;  %v1481_v34 = vld [vmem:[#allocation7 + $0x2] ss:$0 sm:$0xff]  ;;  %v1495_v41 = vld [vmem:[#allocation5 + $0x170] sm:$0xff]  ;;  %v1505_v44 = vld [vmem:[#allocation7 + $0x3] ss:$0 sm:$0xff] }
  0x32   :  { %1111 = vmatpush3.msra.mxu0 %v1401_v6  ;;  %v1491_v40 = vld [vmem:[#allocation5 + $0x180] sm:$0xff]  ;;  %v1508_v49 = vld [vmem:[#allocation5 + $0x1d0] sm:$0xff] }
  0x33   :  { %1112 = vmatprep.subr.mxu0 %v1345_v0  ;;  %v1499_v42 = vld [vmem:[#allocation5 + $0x160] sm:$0xff]  ;;  %v1522_v53 = vld [vmem:[#allocation5 + $0x1b0] sm:$0xff] }
  0x34   :  { %1113 = vmatpush3.msra.mxu0 %v1405_v7  ;;  %v1516_v51 = vld [vmem:[#allocation5 + $0x1c0] sm:$0xff] }
  0x35   :  { %1114 = vmatprep.subr.mxu0 %v1345_v0  ;;  %v1528_v55 = vld [vmem:[#allocation5 + $0x1a0] sm:$0xff] }
  0x36   :  { %1115 = vmatpush3.msra.mxu0 %v1409_v8  ;;  %v1532_v56 = vld [vmem:[#allocation7 + $0x4] ss:$0 sm:$0xff] }
  0x37   :  { %1116 = vmatprep.subr.mxu0 %v1345_v0 }
  0x38   :  { %1117 = vmatpush3.msra.mxu0 %v1413_v9 }
  0x39   :  { %1118 = vmatprep.subr.mxu0 %v1345_v0 }
  0x3a   :  { %1119 = vmatpush3.msra.mxu0 %v1417_v10 }
  0x3b   :  { %1120 = vmatprep.subr.mxu0 %v1345_v0 }
  0x3c   :  { %1121 = vmatpush3.msra.mxu0 %v1421_v11 }
  0x3d   :  { %1122 = vmatprep.subr.mxu0 %v1345_v0 }
  0x3e   :  { %1123 = vmatpush3.msra.mxu0 %v1425_v12 }
  0x3f   :  { %1124 = vmatprep.subr.mxu0 %v1345_v0 }
  0x40   :  { %1125 = vmatpush3.msra.mxu0 %v1429_v13 }
  0x41   :  { %1126 = vmatprep.subr.mxu0 %v1345_v0 }
  0x42   :  { %1127 = vmatpush3.msra.mxu0 %v1433_v14 }
  0x43   :  { %1128 = vmatprep.subr.mxu0 %v1345_v0 }
  0x44   :  { %1129 = vmatpush3.msra.mxu0 %v1437_v15 }
  0x45   :  { %1130 = vmatprep.subr.mxu0 %v1345_v0 }
  0x46   :  { %1131 = vmatpush3.msra.mxu0 %v1441_v16 }
  0x47   :  { %1133 = vmatmul.mubr.f32.vlgmr.msra.gmra.mxu0 %v52_v17  ;;  %1202 = vmatprep.subr.mxu0 %v1345_v0 }
  0x48   :  { %1206 = vmatprep.mubr.msk.f32.mxu0 %vm1346_vm0, %v1345_v0  ;;  %1203 = vmatpush3.msra.mxu0 %v142_v18 }
  0x49   :  { %1204 = vmatprep.subr.mxu0 %v1345_v0 }
  0x4a   :  { %1205 = vmatpush3.msra.mxu0 %v141_v19 }
  0x4b   :  { %1209 = vmatprep.subr.mxu0 %v1345_v0 }
 0x107   :  { %v136_v21 = vpop.f32.mrf.mxu0 }
 0x108   :  { %v137_v22 = vadd.f32 %v136_v21, %v1453_v20 }
 0x109   :  { %v1134_v23 = vpop.f32.mrf.mxu0 }
 0x10a   :  { %v140_v24 = vmax.f32 %v137_v22, 0.0 }
 0x10c   :  { %1140 = vmatmul.mubr.msk.f32.vlgmr.msra.gmra.mxu1 %vm144_vm1, %v140_v24 }
 0x10d   :  { %1146 = vmatprep.mubr.msk.f32.mxu1 %vm1346_vm0, %v1345_v0  ;;  %1143 = vmatpush3.msra.mxu1 %v1459_v25 }
 0x10e   :  { %1144 = vmatprep.subr.mxu1 %v1345_v0 }
 0x10f   :  { %1145 = vmatpush3.msra.mxu1 %v1463_v26 }
 0x110   :  { %1149 = vmatprep.subr.mxu1 %v1345_v0 }
 0x1cc   :  { %v214_v28 = vpop.f32.mrf.mxu1 }
 0x1cd   :  { %v215_v29 = vadd.f32 %v214_v28, %v1467_v27 }
 0x1ce   :  { %v1141_v30 = vpop.f32.mrf.mxu1 }
 0x1cf   :  { %v218_v31 = vmax.f32 %v215_v29, 0.0 }
 0x1d1   :  { %1147 = vmatmul.mubr.msk.f32.vlgmr.msra.gmra.mxu1 %vm144_vm1, %v218_v31 }
 0x1d2   :  { %1153 = vmatprep.mubr.msk.f32.mxu1 %vm1346_vm0, %v1345_v0  ;;  %1150 = vmatpush3.msra.mxu1 %v1473_v32 }
 0x1d3   :  { %1151 = vmatprep.subr.mxu1 %v1345_v0 }
 0x1d4   :  { %1152 = vmatpush3.msra.mxu1 %v1477_v33 }
 0x1d5   :  { %1156 = vmatprep.subr.mxu1 %v1345_v0 }
 0x291   :  { %v291_v35 = vpop.f32.mrf.mxu1 }
 0x292   :  { %v292_v36 = vadd.f32 %v291_v35, %v1481_v34 }
 0x293   :  { %v1148_v37 = vpop.f32.mrf.mxu1 }
 0x294   :  { %v295_v38 = vmax.f32 %v292_v36, 0.0 }
 0x296   :  { %1154 = vmatmul.mubr.msk.f32.vlgmr.msra.gmra.mxu1 %vm144_vm1, %v295_v38 }
 0x297   :  { %1157 = vmatpush3.msra.mxu1 %v1484_v39  ;;  %1164 = vmatprep.mubr.msk.f32.mxu1 %vm1346_vm0, %v1345_v0 }
 0x298   :  { %1158 = vmatprep.subr.mxu1 %v1345_v0 }
 0x299   :  { %1159 = vmatpush3.msra.mxu1 %v1491_v40 }
 0x29a   :  { %1160 = vmatprep.subr.mxu1 %v1345_v0 }
 0x29b   :  { %1161 = vmatpush3.msra.mxu1 %v1495_v41 }
 0x29c   :  { %1162 = vmatprep.subr.mxu1 %v1345_v0 }
 0x29d   :  { %1163 = vmatpush3.msra.mxu1 %v1499_v42 }
 0x29e   :  { %501 = vmatprep.subr.mxu1 %v1502_v43 }
 0x356   :  { %v368_v45 = vpop.f32.mrf.mxu1 }
 0x357   :  { %v369_v46 = vadd.f32 %v368_v45, %v1505_v44 }
 0x358   :  { %v1155_v47 = vpop.f32.mrf.mxu1 }
 0x359   :  { %v372_v48 = vmax.f32 %v369_v46, 0.0 }
 0x35b   :  { %1165 = vmatmul.mubr.msk.f32.vlgmr.msra.gmra.mxu1 %vm378_vm2, %v372_v48 }
 0x35c   :  { %502 = vmatpush1.msra.mxu1 %v1508_v49  ;;  %541 = vmatprep.mubr.f32.mxu1 %v1345_v0 }
 0x35d   :  { %503 = vmatprep.subr.mxu1 %v1510_v50 }
 0x35e   :  { %504 = vmatpush1.msra.mxu1 %v1516_v51 }
 0x35f   :  { %505 = vmatprep.subr.mxu1 %v1519_v52 }
 0x360   :  { %506 = vmatpush1.msra.mxu1 %v1522_v53 }
 0x361   :  { %507 = vmatprep.subr.mxu1 %v1525_v54 }
 0x362   :  { %508 = vmatpush1.msra.mxu1 %v1528_v55 }
 0x363   :  { %1167 = vmatprep.subr.mxu1 %v1345_v0 }
 0x41b   :  { %v448_v57 = vpop.f32.mrf.mxu1 }
 0x41c   :  { %v449_v58 = vadd.f32 %v448_v57, %v1532_v56 }
 0x41d   :  { %v1166_v59 = vpop.f32.mrf.mxu1 }
 0x41e   :  { %v452_v60 = vmax.f32 %v449_v58, 0.0 }
 0x420   :  { %1029 = vmatmul.mubr.msk.f32.vlgmr.msra.gmra.mxu1 %vm378_vm2, %v452_v60 }
 0x421   :  { %1168 = vmatpush3.msra.mxu1 %v1383_v1  ;;  %1199 = vmatprep.mubr.msk.f32.mxu1 %vm1346_vm0, %v1345_v0  ;;  %v462_v1 = vld [vmem:[#allocation7 + $0x5] ss:$8 sm:$0x3] }
 0x422   :  { %1169 = vmatprep.subr.mxu1 %v1345_v0 }
 0x423   :  { %1170 = vmatpush3.msra.mxu1 %v1385_v2  ;;  %v470_v2 = vsub.s32 1, %v465_v62 }
 0x424   :  { %1171 = vmatprep.subr.mxu1 %v1345_v0 }
 0x425   :  { %1172 = vmatpush3.msra.mxu1 %v1389_v3  ;;  %v467_v3 = vrot.slane %v462_v1, %v466_v63 }
 0x426   :  { %1173 = vmatprep.subr.mxu1 %v1345_v0 }
 0x427   :  { %1174 = vmatpush3.msra.mxu1 %v1393_v4  ;;  %v1569_v4 = vrot.slane %v462_v1, %v470_v2 }
 0x428   :  { %1175 = vmatprep.subr.mxu1 %v1345_v0 }
 0x429   :  { %1176 = vmatpush3.msra.mxu1 %v1397_v5 }
 0x42a   :  { %1177 = vmatprep.subr.mxu1 %v1345_v0 }
 0x42b   :  { %1178 = vmatpush3.msra.mxu1 %v1401_v6 }
 0x42c   :  { %1179 = vmatprep.subr.mxu1 %v1345_v0 }
 0x42d   :  { %1180 = vmatpush3.msra.mxu1 %v1405_v7 }
 0x42e   :  { %1181 = vmatprep.subr.mxu1 %v1345_v0 }
 0x42f   :  { %1182 = vmatpush3.msra.mxu1 %v1409_v8 }
 0x430   :  { %1183 = vmatprep.subr.mxu1 %v1345_v0 }
 0x431   :  { %1184 = vmatpush3.msra.mxu1 %v1413_v9 }
 0x432   :  { %1185 = vmatprep.subr.mxu1 %v1345_v0 }
 0x433   :  { %1186 = vmatpush3.msra.mxu1 %v1417_v10 }
 0x434   :  { %1187 = vmatprep.subr.mxu1 %v1345_v0 }
 0x435   :  { %1188 = vmatpush3.msra.mxu1 %v1421_v11 }
 0x436   :  { %1189 = vmatprep.subr.mxu1 %v1345_v0 }
 0x437   :  { %1190 = vmatpush3.msra.mxu1 %v1425_v12 }
 0x438   :  { %1191 = vmatprep.subr.mxu1 %v1345_v0 }
 0x439   :  { %1192 = vmatpush3.msra.mxu1 %v1429_v13 }
 0x43a   :  { %1193 = vmatprep.subr.mxu1 %v1345_v0 }
 0x43b   :  { %1194 = vmatpush3.msra.mxu1 %v1433_v14 }
 0x43c   :  { %1195 = vmatprep.subr.mxu1 %v1345_v0 }
 0x43d   :  { %1196 = vmatpush3.msra.mxu1 %v1437_v15 }
 0x43e   :  { %1197 = vmatprep.subr.mxu1 %v1345_v0 }
 0x43f   :  { %1198 = vmatpush3.msra.mxu1 %v1441_v16 }
 0x4e0   :  { %v543_v5 = vpop.f32.mrf.mxu1 }
 0x4e1   :  { %v544_v6 = vadd.f32 %v543_v5, %v467_v3 }
 0x4e2   :  { %v545_v7 = vpop.f32.mrf.mxu1 }
 0x4e3   :  { %v1030_v8 = vmul.f32 -1.442695, %v544_v6  ;;  %v546_v9 = vadd.f32 %v545_v7, %v1569_v4 }
 0x4e5   :  { %1242 = vpow2.f32 %v1030_v8  ;;  %v1031_v10 = vmul.f32 -1.442695, %v546_v9 }
 0x4e7   :  { %1244 = vpow2.f32 %v1031_v10 }
 0x4f2   :  { %v1243_v11 = vpop.eup %1242 }
 0x4f3   :  { %v554_v12 = vadd.f32 1.0, %v1243_v11 }
 0x4f4   :  { %v1245_v13 = vpop.eup %1244 }
 0x4f5   :  { %1246 = vrcp.f32 %v554_v12  ;;  %v555_v14 = vadd.f32 1.0, %v1245_v13 }
 0x4f7   :  { %1248 = vrcp.f32 %v555_v14 }
 0x502   :  { %v1247_v15 = vpop.eup %1246 }
 0x503   :  { %1006 = vst [vmem:[#allocation8] sm:$0xff] %v1247_v15  ;;  %1200 = vmatmul.mubr.f32.vlgmr.msra.gmra.mxu1 %v1247_v15 }
 0x504   :  { %v1249_v16 = vpop.eup %1248 }
 0x505   :  { %1007 = vst [vmem:[#allocation8 + $0x8] sm:$0xff] %v1249_v16 }
 0x5c3   :  { %v626_v17 = vpop.f32.mrf.mxu1 }
 0x5c4   :  { %v627_v18 = vadd.f32 %v626_v17, %v1453_v20 }
 0x5c5   :  { %v1201_v19 = vpop.f32.mrf.mxu1 }
 0x5c6   :  { %v630_v21 = vmax.f32 %v627_v18, 0.0 }
 0x5c8   :  { %1207 = vmatmul.mubr.msk.f32.vlgmr.msra.gmra.mxu0 %vm144_vm1, %v630_v21 }
 0x5c9   :  { %1210 = vmatpush3.msra.mxu0 %v1459_v25  ;;  %1213 = vmatprep.mubr.msk.f32.mxu0 %vm1346_vm0, %v1345_v0 }
 0x5ca   :  { %1211 = vmatprep.subr.mxu0 %v1345_v0 }
 0x5cb   :  { %1212 = vmatpush3.msra.mxu0 %v1463_v26 }
 0x5cc   :  { %1216 = vmatprep.subr.mxu0 %v1345_v0 }
 0x688   :  { %v700_v22 = vpop.f32.mrf.mxu0 }
 0x689   :  { %v701_v23 = vadd.f32 %v700_v22, %v1467_v27 }
 0x68a   :  { %v1208_v24 = vpop.f32.mrf.mxu0 }
 0x68b   :  { %v704_v20 = vmax.f32 %v701_v23, 0.0 }
 0x68d   :  { %1214 = vmatmul.mubr.msk.f32.vlgmr.msra.gmra.mxu0 %vm144_vm1, %v704_v20 }
 0x68e   :  { %1217 = vmatpush3.msra.mxu0 %v1473_v32  ;;  %1220 = vmatprep.mubr.msk.f32.mxu0 %vm1346_vm0, %v1345_v0 }
 0x68f   :  { %1218 = vmatprep.subr.mxu0 %v1345_v0 }
 0x690   :  { %1219 = vmatpush3.msra.mxu0 %v1477_v33 }
 0x691   :  { %1223 = vmatprep.subr.mxu0 %v1345_v0 }
 0x74d   :  { %v774_v25 = vpop.f32.mrf.mxu0 }
 0x74e   :  { %v775_v26 = vadd.f32 %v774_v25, %v1481_v34 }
 0x74f   :  { %v1215_v28 = vpop.f32.mrf.mxu0 }
 0x750   :  { %v778_v27 = vmax.f32 %v775_v26, 0.0 }
 0x752   :  { %1221 = vmatmul.mubr.msk.f32.vlgmr.msra.gmra.mxu0 %vm144_vm1, %v778_v27 }
 0x753   :  { %1224 = vmatpush3.msra.mxu0 %v1484_v39  ;;  %1231 = vmatprep.mubr.msk.f32.mxu0 %vm1346_vm0, %v1345_v0 }
 0x754   :  { %1225 = vmatprep.subr.mxu0 %v1345_v0 }
 0x755   :  { %1226 = vmatpush3.msra.mxu0 %v1491_v40 }
 0x756   :  { %1227 = vmatprep.subr.mxu0 %v1345_v0 }
 0x757   :  { %1228 = vmatpush3.msra.mxu0 %v1495_v41 }
 0x758   :  { %1229 = vmatprep.subr.mxu0 %v1345_v0 }
 0x759   :  { %1230 = vmatpush3.msra.mxu0 %v1499_v42 }
 0x75a   :  { %954 = vmatprep.subr.mxu0 %v1502_v43 }
 0x812   :  { %v848_v29 = vpop.f32.mrf.mxu0 }
 0x813   :  { %v849_v30 = vadd.f32 %v848_v29, %v1505_v44 }
 0x814   :  { %v1222_v31 = vpop.f32.mrf.mxu0 }
 0x815   :  { %v852_v32 = vmax.f32 %v849_v30, 0.0 }
 0x817   :  { %1232 = vmatmul.mubr.msk.f32.vlgmr.msra.gmra.mxu0 %vm378_vm2, %v852_v32 }
 0x818   :  { %955 = vmatpush1.msra.mxu0 %v1508_v49  ;;  %994 = vmatprep.mubr.f32.mxu0 %v1345_v0 }
 0x819   :  { %956 = vmatprep.subr.mxu0 %v1510_v50 }
 0x81a   :  { %957 = vmatpush1.msra.mxu0 %v1516_v51 }
 0x81b   :  { %958 = vmatprep.subr.mxu0 %v1519_v52 }
 0x81c   :  { %959 = vmatpush1.msra.mxu0 %v1522_v53 }
 0x81d   :  { %960 = vmatprep.subr.mxu0 %v1525_v54 }
 0x81e   :  { %961 = vmatpush1.msra.mxu0 %v1528_v55 }
 0x8d7   :  { %v922_v33 = vpop.f32.mrf.mxu0 }
 0x8d8   :  { %v923_v34 = vadd.f32 %v922_v33, %v1532_v56 }
 0x8d9   :  { %v1233_v35 = vpop.f32.mrf.mxu0 }
 0x8da   :  { %v926_v36 = vmax.f32 %v923_v34, 0.0 }
 0x8dc   :  { %1036 = vmatmul.mubr.msk.f32.vlgmr.msra.gmra.mxu0 %vm378_vm2, %v926_v36 }
 0x99c   :  { %v996_v0 = vpop.f32.mrf.mxu0 }
 0x99e   :  { %v997_v37 = vpop.f32.mrf.mxu0 }
 0x99f   :  { %v998_v38 = vadd.f32 %v997_v37, %v1569_v4 }
 0x9a1   :  { %v1037_v39 = vmul.f32 -1.442695, %v998_v38 }
 0x9a3   :  { %1250 = vpow2.f32 %v1037_v39 }
 0x9b0   :  { %v1251_v40 = vpop.eup %1250 }
 0x9b1   :  { %v1003_v41 = vadd.f32 1.0, %v1251_v40 }
 0x9b3   :  { %1252 = vrcp.f32 %v1003_v41 }
 0x9c0   :  { %v1253_v42 = vpop.eup %1252 }
 0x9c1   :  { %1008 = vst [vmem:[#allocation8 + $0x10] sm:$0xff] %v1253_v42 }
 0x9c2   :  { %1325 = shalt.err (!%p1322_p5)
}
 0x9c3   :  { %1018 = dma.vmem_to_hbm [thread:$0]  %s1016_s2, 384, %s1619_s3, [#allocation4]  }
 0x9c4   :  { %1338 = dma.done.wait [#allocation4], 384  }
 0x9c5   :  { %1339 = vsyncadd [#allocation4], 4294966912 }
 0x9c6   :  { %1022 = vsyncpa [#allocation3], 1 }
 0x9c7   :  { %1023 = vsyncpa [#allocation6], 1 }
 0x9c8   :  { %1024 = vsyncpa [#allocation4], 1 }

</bundles_post_ra>
